<compile_context>
chip_gen: v7x
topology: tpu7x:2x2x1
jax: 0.10.0
libtpu: 0.0.40
codegen_flags: <defaults>
</compile_context>

<pallas_src>
import jax
import jax.numpy as jnp
from jax.experimental import pallas as pl
from jax.experimental.pallas import tpu as pltpu


def _normalize_kernel(img_ref, mean_ref, scale_ref, out_ref):
    # (tile_rows, tile_cols) elementwise; (tile_rows, 1) stats lane-broadcast.
    out_ref[...] = (img_ref[...] - mean_ref[...]) * scale_ref[...]


def _largest_aligned_divisor(dim, align, max_tile):
    """Largest divisor of `dim` that is a multiple of `align` and <= max_tile.
    Falls back to `dim` itself (full-extent block) when no aligned divisor
    exists — full-extent blocks always satisfy the (8, 128) constraint."""
    if dim % align != 0:
        return dim
    best = align
    upper = min(dim, max_tile)
    for t in range(align, upper + 1, align):
        if dim % t == 0:
            best = t
    return best


def normalization(img, mean, std):
    """img: (N, C, H, W); mean/std: (C,). Returns (img - mean) / std."""
    n, c, h, w = img.shape
    dtype = img.dtype

    # Exact reciprocal on C scalars (free, done once in the wrapper) so the
    # hot loop has no divide; numerically within ~1 ulp of (x - m) / std.
    scale = (1.0 / std).astype(dtype)            # (C,)
    mean = mean.astype(dtype)                    # (C,)

    # Lane-dense flattening: last dim = H*W rides the 128-lane axis.
    rows, cols = n * c, h * w
    x2d = img.reshape(rows, cols)

    # Per-row (== per (n, c), channel = row % C) stats as (rows, 1) columns.
    mean_rows = jnp.tile(mean, n).reshape(rows, 1)
    scale_rows = jnp.tile(scale, n).reshape(rows, 1)

    # Tile sizing: lane axis in multiples of 128, sublane axis in multiples of
    # 8, ~2 MiB per tile -> in+out double-buffered stays well under the scoped
    # VMEM limit on every generation (v5e 16 MiB, v6e 32 MiB, v7x 32 MiB).
    itemsize = x2d.dtype.itemsize
    tile_cols = _largest_aligned_divisor(cols, 128, 2048)
    max_rows = max(8, (2 * 1024 * 1024) // (tile_cols * itemsize))
    tile_rows = _largest_aligned_divisor(rows, 8, max_rows)

    grid = (rows // tile_rows, cols // tile_cols)

    out2d = pl.pallas_call(
        _normalize_kernel,
        out_shape=jax.ShapeDtypeStruct((rows, cols), dtype),
        grid_spec=pltpu.PrefetchScalarGridSpec(
            num_scalar_prefetch=0,
            grid=grid,
            in_specs=[
                pl.BlockSpec((tile_rows, tile_cols), lambda i, j: (i, j)),
                pl.BlockSpec((tile_rows, 1), lambda i, j: (i, 0)),
                pl.BlockSpec((tile_rows, 1), lambda i, j: (i, 0)),
            ],
            out_specs=pl.BlockSpec((tile_rows, tile_cols), lambda i, j: (i, j)),
        ),
        compiler_params=pltpu.CompilerParams(
            dimension_semantics=("parallel", "parallel"),
        ),
    )(x2d, mean_rows, scale_rows)

    return out2d.reshape(n, c, h, w)


if __name__ == "__main__":
    key = jax.random.PRNGKey(0)

    # Shapes consistent with an image-normalization module: NCHW, 3 channels.
    N, C, H, W = 2, 3, 16, 16
    img = jax.random.uniform(key, (N, C, H, W), dtype=jnp.float32)

    # Deterministic "ImageNet-like" per-channel stats (module __init__ args).
    mean = jnp.array([0.485, 0.456, 0.406], dtype=jnp.float32)
    std = jnp.array([0.229, 0.224, 0.225], dtype=jnp.float32)

    out = normalization(img, mean, std)
    out = jax.block_until_ready(out)

    # Reference check in plain JAX (true module semantics: subtract then divide).
    ref = (img - mean.reshape(1, C, 1, 1)) / std.reshape(1, C, 1, 1)
    assert out.shape == (N, C, H, W)
    assert jnp.allclose(out, ref, atol=1e-6, rtol=1e-6)

    print("KERNEL_OK")
</pallas_src>

<mosaic_0001>
module attributes {stable_mosaic.version = 11 : i64} {
  func.func @_normalize_kernel(%arg0: i32, %arg1: i32, %arg2: memref<6x256xf32, #tpu.memory_space<vmem>>, %arg3: memref<6x1xf32, #tpu.memory_space<vmem>>, %arg4: memref<6x1xf32, #tpu.memory_space<vmem>>, %arg5: memref<6x256xf32, #tpu.memory_space<vmem>>) attributes {dimension_semantics = [#tpu.dimension_semantics<parallel>, #tpu.dimension_semantics<parallel>], iteration_bounds = array<i64: 1, 1>, scalar_prefetch = 0 : i64, scratch_operands = 0 : i64, tpu.core_type = #tpu.core_type<tc>, window_params = [{transform_indices = @transform_0, window_bounds = array<i64: 6, 256>}, {transform_indices = @transform_1, window_bounds = array<i64: 6, 1>}, {transform_indices = @transform_2, window_bounds = array<i64: 6, 1>}, {transform_indices = @transform_3, window_bounds = array<i64: 6, 256>}]} {
    %c0 = arith.constant 0 : index
    %c0_0 = arith.constant 0 : index
    %0 = vector.load %arg2[%c0, %c0_0] : memref<6x256xf32, #tpu.memory_space<vmem>>, vector<6x256xf32>
    %c0_1 = arith.constant 0 : index
    %c0_2 = arith.constant 0 : index
    %1 = vector.load %arg3[%c0_1, %c0_2] : memref<6x1xf32, #tpu.memory_space<vmem>>, vector<6x1xf32>
    %2 = vector.broadcast %1 : vector<6x1xf32> to vector<6x256xf32>
    %3 = arith.subf %0, %2 : vector<6x256xf32>
    %c0_3 = arith.constant 0 : index
    %c0_4 = arith.constant 0 : index
    %4 = vector.load %arg4[%c0_3, %c0_4] : memref<6x1xf32, #tpu.memory_space<vmem>>, vector<6x1xf32>
    %5 = vector.broadcast %4 : vector<6x1xf32> to vector<6x256xf32>
    %6 = arith.mulf %3, %5 : vector<6x256xf32>
    %c0_5 = arith.constant 0 : index
    %c0_6 = arith.constant 0 : index
    %7 = vector.load %arg5[%c0_5, %c0_6] : memref<6x256xf32, #tpu.memory_space<vmem>>, vector<6x256xf32>
    tpu.vector_store %arg5[%c0_5, %c0_6], %6 {strides = array<i32>} : memref<6x256xf32, #tpu.memory_space<vmem>>, vector<6x256xf32>,
    return
  }
  func.func @transform_0(%arg0: i32, %arg1: i32) -> (i32, i32) {
    %c0_i32 = arith.constant 0 : i32
    return %arg0, %arg1 : i32, i32
  }
  func.func @transform_1(%arg0: i32, %arg1: i32) -> (i32, i32) {
    %c0_i32 = arith.constant 0 : i32
    %c0_i32_0 = arith.constant 0 : i32
    return %arg0, %c0_i32 : i32, i32
  }
  func.func @transform_2(%arg0: i32, %arg1: i32) -> (i32, i32) {
    %c0_i32 = arith.constant 0 : i32
    %c0_i32_0 = arith.constant 0 : i32
    return %arg0, %c0_i32 : i32, i32
  }
  func.func @transform_3(%arg0: i32, %arg1: i32) -> (i32, i32) {
    %c0_i32 = arith.constant 0 : i32
    return %arg0, %arg1 : i32, i32
  }
}

</mosaic_0001>

<bundles_post_ra>
// kernel: tpu_custom_call.1
= control target key start
LH: loop header
LB: loop body
LE: loop exit
PB: predicated region body
PF: predicated region fallthrough
CT: control target
= control target key end

     0   :  { %v76_v1 = vmov 0   ;;  %s122_s0 = inlined_call_operand.vmem [shape: f32[6,256], index: 0, kind: input, shape index: {}]   ;;  %s123_s1 = inlined_call_operand.vmem [shape: f32[6,1], index: 1, kind: input, shape index: {}]   ;;  %s124_s2 = inlined_call_operand.vmem [shape: f32[6,1], index: 2, kind: input, shape index: {}]   ;;  %s125_s3 = inlined_call_operand.hbm [shape: f32[6,256], index: 3, kind: output, shape index: {}]  }
   0x1   :  { %v17_v0 = vld [vmem:[%s123_s1] sm:$0x3f]  ;;  %51 = vset.pattern.permute.xlu0 %v76_v1 }
   0x2   :  { %8 = vsyncpa [#allocation3], 0  ;;  %20 = vperm.xlu0 %51, %v17_v0   ;;  %v25_v2 = vld [vmem:[%s124_s2] sm:$0x3f]  ;;  %v16_v5 = vld [vmem:[%s122_s0 + $0x8] sm:$0x3f] }
   0x3   :  { %v15_v4 = vld [vmem:[%s122_s0] sm:$0x3f]  ;;  %s77_s20 = smov [#allocation2]  }
   0x4   :  { %s41_s1 = sshll.u32 %s77_s20, 4  ;;  %s42_s1 = int_to_ptr.vmem [resolvable:$true] %s41_s1 }
   0x5   :  { %s52_s2 = scalar_lea.vmem %s42_s1, 256  ;;  %p57_p1 = scmp.lt.s32.totalorder %s42_s1, %s42_s1 }
   0x6   :  { %28 = vperm.xlu0 %51, %v25_v2   ;;  %p53_p0 = scmp.ne.s32.totalorder %s42_s1, %s52_s2  ;;  %p58_p2 = scmp.lt.s32.totalorder %s52_s2, %s52_s2 }
   0x8   :  { %p59_p3 = por %p58_p2, %p57_p1 }
   0xa   :  { %p60_p4 = pnand %p59_p3, %p53_p0 }
  0x81   :  { %v21_v3 = vpop.permute.xlu0 %20 }
  0x82   :  { %v23_v6 = vsub.f32 %v15_v4, %v21_v3  ;;  %v24_v7 = vsub.f32 %v16_v5, %v21_v3 }
  0x85   :  { %v29_v8 = vpop.permute.xlu0 %28 }
  0x86   :  { %v31_v9 = vmul.f32 %v29_v8, %v23_v6  ;;  %v32_v10 = vmul.f32 %v29_v8, %v24_v7 }
  0x88   :  { %33 = vst [vmem:[#allocation2] sm:$0x3f] %v31_v9  ;;  %34 = vst [vmem:[#allocation2 + $0x8] sm:$0x3f] %v32_v10 }
  0x89   :  { %63 = shalt.err (!%p60_p4)
}
  0x8a   :  { %s64_s0 = scalar_lea.hbm %s125_s3, 256 }
  0x8b   :  { %p65_p5 = scmp.ne.s32.totalorder %s125_s3, %s64_s0  ;;  %p68_p6 = scmp.lt.u32.totalorder %s64_s0, %s125_s3 }
  0x8d   :  { %p70_p7 = pnand %p68_p6, %p65_p5 }
  0x8f   :  { %73 = shalt.err (!%p70_p7)
}
  0x90   :  { %44 = dma.vmem_to_hbm [thread:$0]  %s42_s1, 256, %s125_s3, [#allocation3]  }
  0x91   :  { %74 = dma.done.wait [#allocation3], 256  }
  0x92   :  { %75 = vsyncadd [#allocation3], 4294967040 }
  0x93   :  { %48 = vsyncpa [#allocation3], 1 }

</bundles_post_ra>
